<compile_context>
chip_gen: v6e
topology: v6e:2x2x1
jax: 0.10.0
libtpu: 0.0.40
codegen_flags: <defaults>
</compile_context>

<pallas_src>
import jax
import jax.numpy as jnp
from jax.experimental import pallas as pl
from jax.experimental.pallas import tpu as pltpu

DIFFUSION_STEPS = 1000.0  # stands in for `current_diffusion_steps`


def _round_up(x, m):
    return ((x + m - 1) // m) * m


# --------------------------------------------------------------------------
# Kernel
# --------------------------------------------------------------------------
def _mlp_kernel(x_ref, t_ref,
                w1x_ref, w1t_ref, b1_ref,
                w2_ref, b2_ref,
                w3_ref, b3_ref,
                o_ref):
    # x_ref: [TB, D] f32   t_ref: [TB, 1] f32
    # w1x/w2/w3: bf16 (MXU operands); w1t/b1/b2/b3: f32 (VPU epilogue).
    x = x_ref[...]
    t_norm = t_ref[...]

    # Layer 1: bf16 MXU matmul (f32 accumulate) + f32 rank-1 time term
    # (replaces torch.cat([x, t_norm], dim=1)) + bias + ReLU, all in f32.
    h = jnp.dot(x.astype(jnp.bfloat16), w1x_ref[...],
                preferred_element_type=jnp.float32)
    h = h + t_norm * w1t_ref[...] + b1_ref[...]
    h = jnp.maximum(h, 0.0)

    # Layer 2: hidden -> hidden. Cast activations to bf16 only at the dot.
    h = jnp.dot(h.astype(jnp.bfloat16), w2_ref[...],
                preferred_element_type=jnp.float32) + b2_ref[...]
    h = jnp.maximum(h, 0.0)

    # Layer 3: hidden -> padded output, lane-dense store.
    out = jnp.dot(h.astype(jnp.bfloat16), w3_ref[...],
                  preferred_element_type=jnp.float32) + b3_ref[...]
    o_ref[...] = out.astype(o_ref.dtype)


# --------------------------------------------------------------------------
# One-time parameter preparation (hoisted out of the forward hot path)
# --------------------------------------------------------------------------
def prepare_params(params, input_dim, weight_dtype=jnp.bfloat16):
    """Pad weights to lane-aligned widths and cast matmul weights to bf16.

    Call ONCE (or cache): this re-reads/re-writes the full weight matrices in
    HBM, which you do not want on every forward call.
    Expected (transposed vs. nn.Linear, i.e. [in, out]):
      w1: [input_dim + 1, hidden]  b1: [hidden]
      w2: [hidden, hidden]         b2: [hidden]
      w3: [hidden, input_dim]      b3: [input_dim]
    """
    hidden_dim = params["w1"].shape[1]
    H_pad = _round_up(hidden_dim, 128)
    D_out_pad = _round_up(input_dim, 128)
    hp = H_pad - hidden_dim
    dp = D_out_pad - input_dim

    w1 = params["w1"].astype(jnp.float32)
    w1x = jnp.pad(w1[:input_dim], ((0, 0), (0, hp))).astype(weight_dtype)
    w1t = jnp.pad(w1[input_dim:input_dim + 1], ((0, 0), (0, hp)))           # f32
    b1 = jnp.pad(params["b1"].astype(jnp.float32).reshape(1, -1), ((0, 0), (0, hp)))
    w2 = jnp.pad(params["w2"].astype(jnp.float32), ((0, hp), (0, hp))).astype(weight_dtype)
    b2 = jnp.pad(params["b2"].astype(jnp.float32).reshape(1, -1), ((0, 0), (0, hp)))
    w3 = jnp.pad(params["w3"].astype(jnp.float32), ((0, hp), (0, dp))).astype(weight_dtype)
    b3 = jnp.pad(params["b3"].astype(jnp.float32).reshape(1, -1), ((0, 0), (0, dp)))

    return {
        "w1x": w1x, "w1t": w1t, "b1": b1,
        "w2": w2, "b2": b2, "w3": w3, "b3": b3,
        "input_dim": input_dim, "hidden_dim": hidden_dim,
        "H_pad": H_pad, "D_out_pad": D_out_pad,
    }


def _choose_tb(batch):
    """Batch tile: sublane-aligned, >=2 grid steps when possible (v7x has two
    TensorCores), capped at 512 rows, low batch-padding waste."""
    b8 = _round_up(batch, 8)
    if b8 <= 8:
        return 8
    return min(512, _round_up(pl.cdiv(b8, 2), 8))


# --------------------------------------------------------------------------
# Forward wrapper
# --------------------------------------------------------------------------
def diffusion_mlp_forward(x, t, prepared, *, diffusion_steps=DIFFUSION_STEPS):
    """Pallas implementation of DiffusionMLP.forward(x, t).

    x: [B, input_dim] float32, t: [B] int/float timestep.
    `prepared` comes from prepare_params().
    """
    B, input_dim = x.shape
    assert input_dim == prepared["input_dim"]
    H_pad = prepared["H_pad"]
    D_out_pad = prepared["D_out_pad"]

    TB = _choose_tb(B)
    B_pad = _round_up(max(B, TB), TB)
    grid = (B_pad // TB,)

    t_norm = (t.astype(jnp.float32) / diffusion_steps).reshape(B, 1)
    x_p = jnp.pad(x.astype(jnp.float32), ((0, B_pad - B), (0, 0)))
    t_p = jnp.pad(t_norm, ((0, B_pad - B), (0, 0)))

    def batch_spec(shape):
        return pl.BlockSpec(shape, lambda i: (i, 0))

    def const_spec(shape):
        # Constant block index -> single-buffer: double-buffering a weight
        # that never changes only doubles its VMEM footprint.
        try:
            return pl.BlockSpec(shape, lambda i: (0, 0),
                                pipeline_mode=pl.Buffered(1))
        except TypeError:  # older BlockSpec signature without pipeline_mode
            return pl.BlockSpec(shape, lambda i: (0, 0))

    in_specs = [
        batch_spec((TB, input_dim)),      # x
        batch_spec((TB, 1)),              # t_norm
        const_spec((input_dim, H_pad)),   # w1x (bf16, VMEM-resident)
        const_spec((1, H_pad)),           # w1t (f32)
        const_spec((1, H_pad)),           # b1
        const_spec((H_pad, H_pad)),       # w2 (bf16)
        const_spec((1, H_pad)),           # b2
        const_spec((H_pad, D_out_pad)),   # w3 (bf16)
        const_spec((1, D_out_pad)),       # b3
    ]
    out_spec = batch_spec((TB, D_out_pad))

    operands = (x_p, t_p,
                prepared["w1x"], prepared["w1t"], prepared["b1"],
                prepared["w2"], prepared["b2"],
                prepared["w3"], prepared["b3"])

    # Explicit VMEM budget: single-buffered weights + double-buffered
    # activation/output tiles + headroom (default scoped limit is only
    # 16 MiB on v5e / 32 MiB on v6e & v7x).
    bytes_weights = sum(int(a.size) * a.dtype.itemsize for a in operands[2:])
    bytes_act_in = 2 * 4 * TB * (input_dim + 1)          # x + t, f32, 2 bufs
    bytes_out = 2 * x.dtype.itemsize * TB * D_out_pad    # out, 2 bufs
    vmem_limit = int(1.5 * (bytes_weights + bytes_act_in + bytes_out)) + (4 << 20)
    vmem_limit = min(vmem_limit, 128 * 1024 * 1024)

    flops = 2 * B_pad * (input_dim * H_pad + H_pad * H_pad + H_pad * D_out_pad)
    bytes_accessed = (bytes_weights + 4 * (x_p.size + t_p.size)
                      + x.dtype.itemsize * B_pad * D_out_pad)
    cost = pl.CostEstimate(flops=flops, transcendentals=0,
                           bytes_accessed=bytes_accessed)

    out_padded = pl.pallas_call(
        _mlp_kernel,
        out_shape=jax.ShapeDtypeStruct((B_pad, D_out_pad), x.dtype),
        grid=grid,
        in_specs=in_specs,
        out_specs=out_spec,
        compiler_params=pltpu.CompilerParams(
            dimension_semantics=("parallel",),
            vmem_limit_bytes=vmem_limit),
        cost_estimate=cost,
    )(*operands)

    # Slice off batch padding and the lane padding of the output width.
    return out_padded[:B, :input_dim]


# --------------------------------------------------------------------------
# Synthetic init + pure-JAX reference (PyTorch semantics)
# --------------------------------------------------------------------------
def init_params(key, input_dim, hidden_dim, dtype=jnp.float32):
    """nn.Linear-style init; weights stored transposed as [in, out]."""
    dims = [(input_dim + 1, hidden_dim),
            (hidden_dim, hidden_dim),
            (hidden_dim, input_dim)]
    params = {}
    for i, (din, dout) in enumerate(dims, start=1):
        key, kw, kb = jax.random.split(key, 3)
        bound = 1.0 / jnp.sqrt(jnp.float32(din))
        params[f"w{i}"] = jax.random.uniform(
            kw, (din, dout), jnp.float32, minval=-bound, maxval=bound).astype(dtype)
        params[f"b{i}"] = jax.random.uniform(
            kb, (dout,), jnp.float32, minval=-bound, maxval=bound).astype(dtype)
    return params


def _reference_forward(x, t, params, *, diffusion_steps=DIFFUSION_STEPS):
    """All-f32 reference mirroring the PyTorch module."""
    t_norm = (t.astype(jnp.float32) / diffusion_steps).reshape(-1, 1)
    h = jnp.concatenate([x, t_norm], axis=1)
    h = jnp.maximum(h @ params["w1"] + params["b1"], 0.0)
    h = jnp.maximum(h @ params["w2"] + params["b2"], 0.0)
    return h @ params["w3"] + params["b3"]


if __name__ == "__main__":
    key = jax.random.PRNGKey(0)
    k_params, k_x, k_t = jax.random.split(key, 3)

    batch = 8
    input_dim = 16
    hidden_dim = 32

    params = init_params(k_params, input_dim, hidden_dim)
    prepared = prepare_params(params, input_dim)   # one-time pad + bf16 cast

    x = jax.random.normal(k_x, (batch, input_dim), jnp.float32)
    t = jax.random.randint(k_t, (batch,), 0, int(DIFFUSION_STEPS), jnp.int32)

    out = diffusion_mlp_forward(x, t, prepared)
    out = jax.block_until_ready(out)

    ref = _reference_forward(x, t, params)
    assert out.shape == (batch, input_dim)
    # bf16 MXU operands vs. an all-f32 reference -> loose tolerance.
    assert jnp.allclose(out, ref, atol=5e-2, rtol=5e-2), float(
        jnp.max(jnp.abs(out - ref)))

    print("KERNEL_OK")
</pallas_src>

<mosaic_0001>
module attributes {stable_mosaic.version = 11 : i64} {
  func.func @_mlp_kernel(%arg0: i32, %arg1: memref<8x16xf32, #tpu.memory_space<vmem>>, %arg2: memref<8x1xf32, #tpu.memory_space<vmem>>, %arg3: memref<16x128xbf16, #tpu.memory_space<vmem>>, %arg4: memref<1x128xf32, #tpu.memory_space<vmem>>, %arg5: memref<1x128xf32, #tpu.memory_space<vmem>>, %arg6: memref<128x128xbf16, #tpu.memory_space<vmem>>, %arg7: memref<1x128xf32, #tpu.memory_space<vmem>>, %arg8: memref<128x128xbf16, #tpu.memory_space<vmem>>, %arg9: memref<1x128xf32, #tpu.memory_space<vmem>>, %arg10: memref<8x128xf32, #tpu.memory_space<vmem>>) attributes {dimension_semantics = [#tpu.dimension_semantics<parallel>], iteration_bounds = array<i64: 1>, scalar_prefetch = 0 : i64, scratch_operands = 0 : i64, tpu.core_type = #tpu.core_type<tc>, window_params = [{transform_indices = @transform_0, window_bounds = array<i64: 8, 16>}, {transform_indices = @transform_1, window_bounds = array<i64: 8, 1>}, {pipeline_mode = #tpu.pipeline_mode<synchronous>, transform_indices = @transform_2, window_bounds = array<i64: 16, 128>}, {pipeline_mode = #tpu.pipeline_mode<synchronous>, transform_indices = @transform_3, window_bounds = array<i64: 1, 128>}, {pipeline_mode = #tpu.pipeline_mode<synchronous>, transform_indices = @transform_4, window_bounds = array<i64: 1, 128>}, {pipeline_mode = #tpu.pipeline_mode<synchronous>, transform_indices = @transform_5, window_bounds = array<i64: 128, 128>}, {pipeline_mode = #tpu.pipeline_mode<synchronous>, transform_indices = @transform_6, window_bounds = array<i64: 1, 128>}, {pipeline_mode = #tpu.pipeline_mode<synchronous>, transform_indices = @transform_7, window_bounds = array<i64: 128, 128>}, {pipeline_mode = #tpu.pipeline_mode<synchronous>, transform_indices = @transform_8, window_bounds = array<i64: 1, 128>}, {transform_indices = @transform_9, window_bounds = array<i64: 8, 128>}]} {
    %c0 = arith.constant 0 : index
    %c0_0 = arith.constant 0 : index
    %0 = vector.load %arg1[%c0, %c0_0] : memref<8x16xf32, #tpu.memory_space<vmem>>, vector<8x16xf32>
    %c0_1 = arith.constant 0 : index
    %c0_2 = arith.constant 0 : index
    %1 = vector.load %arg2[%c0_1, %c0_2] : memref<8x1xf32, #tpu.memory_space<vmem>>, vector<8x1xf32>
    %2 = arith.truncf %0 : vector<8x16xf32> to vector<8x16xbf16>
    %c0_3 = arith.constant 0 : index
    %c0_4 = arith.constant 0 : index
    %3 = vector.load %arg3[%c0_3, %c0_4] : memref<16x128xbf16, #tpu.memory_space<vmem>>, vector<16x128xbf16>
    %cst = arith.constant dense<0.000000e+00> : vector<8x128xf32>
    %4 = tpu.matmul %2, %3, %cst {dimension_numbers = #tpu.dot_dimension_numbers<[1], [0], [0], [1], [0, 0, 1, 1], [], []>} : vector<8x16xbf16>, vector<16x128xbf16>, vector<8x128xf32> -> vector<8x128xf32>
    %c0_5 = arith.constant 0 : index
    %c0_6 = arith.constant 0 : index
    %5 = vector.load %arg4[%c0_5, %c0_6] : memref<1x128xf32, #tpu.memory_space<vmem>>, vector<1x128xf32>
    %6 = vector.broadcast %1 : vector<8x1xf32> to vector<8x128xf32>
    %7 = vector.broadcast %5 : vector<1x128xf32> to vector<8x128xf32>
    %8 = arith.mulf %6, %7 : vector<8x128xf32>
    %9 = arith.addf %4, %8 : vector<8x128xf32>
    %c0_7 = arith.constant 0 : index
    %c0_8 = arith.constant 0 : index
    %10 = vector.load %arg5[%c0_7, %c0_8] : memref<1x128xf32, #tpu.memory_space<vmem>>, vector<1x128xf32>
    %11 = vector.broadcast %10 : vector<1x128xf32> to vector<8x128xf32>
    %12 = arith.addf %9, %11 : vector<8x128xf32>
    %cst_9 = arith.constant 0.000000e+00 : f32
    %13 = vector.broadcast %cst_9 : f32 to vector<8x128xf32>
    %14 = arith.maximumf %12, %13 : vector<8x128xf32>
    %15 = arith.truncf %14 : vector<8x128xf32> to vector<8x128xbf16>
    %c0_10 = arith.constant 0 : index
    %c0_11 = arith.constant 0 : index
    %16 = vector.load %arg6[%c0_10, %c0_11] : memref<128x128xbf16, #tpu.memory_space<vmem>>, vector<128x128xbf16>
    %cst_12 = arith.constant dense<0.000000e+00> : vector<8x128xf32>
    %17 = tpu.matmul %15, %16, %cst_12 {dimension_numbers = #tpu.dot_dimension_numbers<[1], [0], [0], [1], [0, 0, 1, 1], [], []>} : vector<8x128xbf16>, vector<128x128xbf16>, vector<8x128xf32> -> vector<8x128xf32>
    %c0_13 = arith.constant 0 : index
    %c0_14 = arith.constant 0 : index
    %18 = vector.load %arg7[%c0_13, %c0_14] : memref<1x128xf32, #tpu.memory_space<vmem>>, vector<1x128xf32>
    %19 = vector.broadcast %18 : vector<1x128xf32> to vector<8x128xf32>
    %20 = arith.addf %17, %19 : vector<8x128xf32>
    %cst_15 = arith.constant 0.000000e+00 : f32
    %21 = vector.broadcast %cst_15 : f32 to vector<8x128xf32>
    %22 = arith.maximumf %20, %21 : vector<8x128xf32>
    %23 = arith.truncf %22 : vector<8x128xf32> to vector<8x128xbf16>
    %c0_16 = arith.constant 0 : index
    %c0_17 = arith.constant 0 : index
    %24 = vector.load %arg8[%c0_16, %c0_17] : memref<128x128xbf16, #tpu.memory_space<vmem>>, vector<128x128xbf16>
    %cst_18 = arith.constant dense<0.000000e+00> : vector<8x128xf32>
    %25 = tpu.matmul %23, %24, %cst_18 {dimension_numbers = #tpu.dot_dimension_numbers<[1], [0], [0], [1], [0, 0, 1, 1], [], []>} : vector<8x128xbf16>, vector<128x128xbf16>, vector<8x128xf32> -> vector<8x128xf32>
    %c0_19 = arith.constant 0 : index
    %c0_20 = arith.constant 0 : index
    %26 = vector.load %arg9[%c0_19, %c0_20] : memref<1x128xf32, #tpu.memory_space<vmem>>, vector<1x128xf32>
    %27 = vector.broadcast %26 : vector<1x128xf32> to vector<8x128xf32>
    %28 = arith.addf %25, %27 : vector<8x128xf32>
    %c0_21 = arith.constant 0 : index
    %c0_22 = arith.constant 0 : index
    %29 = vector.load %arg10[%c0_21, %c0_22] : memref<8x128xf32, #tpu.memory_space<vmem>>, vector<8x128xf32>
    tpu.vector_store %arg10[%c0_21, %c0_22], %28 {strides = array<i32>} : memref<8x128xf32, #tpu.memory_space<vmem>>, vector<8x128xf32>,
    return
  }
  func.func @transform_0(%arg0: i32) -> (i32, i32) {
    %c0_i32 = arith.constant 0 : i32
    %c0_i32_0 = arith.constant 0 : i32
    return %arg0, %c0_i32 : i32, i32
  }
  func.func @transform_1(%arg0: i32) -> (i32, i32) {
    %c0_i32 = arith.constant 0 : i32
    %c0_i32_0 = arith.constant 0 : i32
    return %arg0, %c0_i32 : i32, i32
  }
  func.func @transform_2(%arg0: i32) -> (i32, i32) {
    %c0_i32 = arith.constant 0 : i32
    %c0_i32_0 = arith.constant 0 : i32
    %c0_i32_1 = arith.constant 0 : i32
    return %c0_i32, %c0_i32_0 : i32, i32
  }
  func.func @transform_3(%arg0: i32) -> (i32, i32) {
    %c0_i32 = arith.constant 0 : i32
    %c0_i32_0 = arith.constant 0 : i32
    %c0_i32_1 = arith.constant 0 : i32
    return %c0_i32, %c0_i32_0 : i32, i32
  }
  func.func @transform_4(%arg0: i32) -> (i32, i32) {
    %c0_i32 = arith.constant 0 : i32
    %c0_i32_0 = arith.constant 0 : i32
    %c0_i32_1 = arith.constant 0 : i32
    return %c0_i32, %c0_i32_0 : i32, i32
  }
  func.func @transform_5(%arg0: i32) -> (i32, i32) {
    %c0_i32 = arith.constant 0 : i32
    %c0_i32_0 = arith.constant 0 : i32
    %c0_i32_1 = arith.constant 0 : i32
    return %c0_i32, %c0_i32_0 : i32, i32
  }
  func.func @transform_6(%arg0: i32) -> (i32, i32) {
    %c0_i32 = arith.constant 0 : i32
    %c0_i32_0 = arith.constant 0 : i32
    %c0_i32_1 = arith.constant 0 : i32
    return %c0_i32, %c0_i32_0 : i32, i32
  }
  func.func @transform_7(%arg0: i32) -> (i32, i32) {
    %c0_i32 = arith.constant 0 : i32
    %c0_i32_0 = arith.constant 0 : i32
    %c0_i32_1 = arith.constant 0 : i32
    return %c0_i32, %c0_i32_0 : i32, i32
  }
  func.func @transform_8(%arg0: i32) -> (i32, i32) {
    %c0_i32 = arith.constant 0 : i32
    %c0_i32_0 = arith.constant 0 : i32
    %c0_i32_1 = arith.constant 0 : i32
    return %c0_i32, %c0_i32_0 : i32, i32
  }
  func.func @transform_9(%arg0: i32) -> (i32, i32) {
    %c0_i32 = arith.constant 0 : i32
    %c0_i32_0 = arith.constant 0 : i32
    return %arg0, %c0_i32 : i32, i32
  }
}

</mosaic_0001>

<bundles_post_ra>
// kernel: tpu_custom_call.1
= control target key start
LH: loop header
LB: loop body
LE: loop exit
PB: predicated region body
PF: predicated region fallthrough
CT: control target
= control target key end

     0   :  { %14 = vsyncpa [#allocation3], 0  ;;  %s707_s0 = inlined_call_operand.vmem [shape: f32[8,16], index: 0, kind: input, shape index: {}]   ;;  %s708_s1 = inlined_call_operand.vmem [shape: f32[8,1], index: 1, kind: input, shape index: {}]   ;;  %s709_s2 = inlined_call_operand.hbm [shape: bf16[16,128], index: 2, kind: input, shape index: {}]   ;;  %s710_s3 = inlined_call_operand.vmem [shape: f32[1,128], index: 3, kind: input, shape index: {}]   ;;  %s711_s4 = inlined_call_operand.vmem [shape: f32[1,128], index: 4, kind: input, shape index: {}]   ;;  %s712_s5 = inlined_call_operand.hbm [shape: bf16[128,128], index: 5, kind: input, shape index: {}]   ;;  %s713_s6 = inlined_call_operand.vmem [shape: f32[1,128], index: 6, kind: input, shape index: {}]   ;;  %s714_s7 = inlined_call_operand.hbm [shape: bf16[128,128], index: 7, kind: input, shape index: {}]   ;;  %s715_s8 = inlined_call_operand.vmem [shape: f32[1,128], index: 8, kind: input, shape index: {}]   ;;  %s716_s9 = inlined_call_operand.hbm [shape: f32[8,128], index: 9, kind: output, shape index: {}]  }
   0x1   :  { %15 = vsyncpa [#allocation6], 0 }
   0x2   :  { %16 = vsyncpa [#allocation4], 0  ;;  %s595_s30 = smov [#allocation5]   ;;  %s596_s11 = smov [#allocation2]  }
   0x3   :  { %s42_s10 = sshll.u32 %s595_s30, 4  ;;  %s26_s12 = sshll.u32 %s596_s11, 4  ;;  %s43_s10 = int_to_ptr.vmem [resolvable:$true] %s42_s10  ;;  %s27_s12 = int_to_ptr.vmem [resolvable:$true] %s26_s12 }
   0x4   :  { %s517_s13 = scalar_lea.vmem %s43_s10, 1024  ;;  %p522_p1 = scmp.lt.s32.totalorder %s43_s10, %s43_s10 }
   0x5   :  { %p518_p0 = scmp.ne.s32.totalorder %s43_s10, %s517_s13  ;;  %p523_p2 = scmp.lt.s32.totalorder %s517_s13, %s517_s13 }
   0x7   :  { %p524_p3 = por %p523_p2, %p522_p1 }
   0x9   :  { %p525_p4 = pnand %p524_p3, %p518_p0 }
   0xb   :  { %528 = shalt.err (!%p525_p4)
}
   0xc   :  { %s597_s14 = smov 64   ;;  %s598_s15 = smov 4  }
   0xd   :  { %48 = dma.hbm_to_vmem [thread:$0]  %s712_s5, 1024, %s43_s10, [#allocation6], %s597_s14, %s597_s14, %s598_s15  }
   0xe   :  { %s537_s18 = scalar_lea.vmem %s27_s12, 128  ;;  %p542_p6 = scmp.lt.s32.totalorder %s27_s12, %s27_s12 }
   0xf   :  { %p538_p5 = scmp.ne.s32.totalorder %s27_s12, %s537_s18  ;;  %p543_p7 = scmp.lt.s32.totalorder %s537_s18, %s537_s18 }
  0x11   :  { %p544_p8 = por %p543_p7, %p542_p6 }
  0x13   :  { %p545_p9 = pnand %p544_p8, %p538_p5 }
  0x15   :  { %548 = shalt.err (!%p545_p9)
}
  0x16   :  { %32 = dma.hbm_to_vmem [thread:$0]  %s709_s2, 128, %s27_s12, [#allocation3], %s597_s14, %s597_s14, %s598_s15  }
  0x17   :  { %s599_s21 = smov [#allocation7]  }
  0x18   :  { %s56_s22 = sshll.u32 %s599_s21, 4  ;;  %s57_s22 = int_to_ptr.vmem [resolvable:$true] %s56_s22 }
  0x19   :  { %s557_s23 = scalar_lea.vmem %s57_s22, 1024  ;;  %p562_p11 = scmp.lt.s32.totalorder %s57_s22, %s57_s22 }
  0x1a   :  { %p558_p10 = scmp.ne.s32.totalorder %s57_s22, %s557_s23  ;;  %p563_p12 = scmp.lt.s32.totalorder %s557_s23, %s557_s23 }
  0x1c   :  { %p564_p13 = por %p563_p12, %p562_p11 }
  0x1e   :  { %p565_p0 = pnand %p564_p13, %p558_p10 }
  0x20   :  { %568 = shalt.err (!%p565_p0)
}
  0x21   :  { %62 = dma.hbm_to_vmem [thread:$0]  %s714_s7, 1024, %s57_s22, [#allocation6], %s597_s14, %s597_s14, %s598_s15  }
  0x22   :  { %589 = dma.done.wait [#allocation3], 128  }
  0x23   :  { %590 = vsyncadd [#allocation3], 4294967168 }
  0x24   :  { %591 = dma.done.wait [#allocation6], 2048  }
  0x25   :  { %592 = vsyncadd [#allocation6], 4294965248  ;;  %v600_v0 = vmov 0.0   ;;  %vm601_vm0 = vmmov 0   ;;  %v602_v1 = vmov 0   ;;  %v492_v2 = vld [vmem:[#allocation2] sm:$0xff]  }
  0x26   :  { %436 = vmatprep.subr.bf16.mxu0 %v600_v0  ;;  %438 = vmatprep.mubr.msk.bf16.mxu0 %vm601_vm0, %v600_v0  ;;  %v75_v3 = vld [vmem:[%s707_s0] sm:$0xff]  ;;  %vm99_vm1 = vcmask 130048   ;;  %v494_v7 = vld [vmem:[#allocation5 + $0x30] sm:$0xff]   ;;  %v495_v8 = vld [vmem:[#allocation5 + $0x28] sm:$0xff]   ;;  %s603_s10 = smov [#allocation8]  }
  0x27   :  { %491 = vset.pattern.permute.xlu0 %v602_v1  ;;  %442 = vmatprep.subr.bf16.mxu1 %v600_v0  ;;  %v76_v4 = vld [vmem:[%s708_s1] sm:$0xff]  ;;  %v77_v5 = vpack.c.bf16 %v75_v3, %v75_v3  ;;  %v496_v9 = vld [vmem:[#allocation5 + $0x20] sm:$0xff]   ;;  %v498_v11 = vld [vmem:[#allocation5 + $0x10] sm:$0xff]   ;;  %s384_s11 = sshll.u32 %s603_s10, 4  ;;  %s385_s11 = int_to_ptr.vmem [resolvable:$true] %s384_s11 }
  0x28   :  { %458 = vmatprep.mubr.msk.bf16.mxu1 %vm601_vm0, %v600_v0  ;;  %437 = vmatpush3.bf16.msra.mxu0 %v492_v2  ;;  %v493_v6 = vld [vmem:[#allocation5 + $0x38] sm:$0xff]   ;;  %v499_v12 = vld [vmem:[#allocation5 + $0x8] sm:$0xff]   ;;  %v500_v13 = vld [vmem:[#allocation5] sm:$0xff]   ;;  %p574_p2 = scmp.lt.s32.totalorder %s385_s11, %s385_s11 }
  0x29   :  { %83 = vperm.xlu0 %491, %v76_v4   ;;  %462 = vmatprep.subr.bf16.mxu0 %v600_v0  ;;  %v497_v10 = vld [vmem:[#allocation5 + $0x18] sm:$0xff]   ;;  %v502_v15 = vld [vmem:[#allocation7 + $0x30] sm:$0xff]   ;;  %v503_v16 = vld [vmem:[#allocation7 + $0x28] sm:$0xff]  }
  0x2a   :  { %443 = vmatpush3.bf16.msra.mxu1 %v493_v6  ;;  %v501_v14 = vld [vmem:[#allocation7 + $0x38] sm:$0xff]   ;;  %v504_v17 = vld [vmem:[#allocation7 + $0x20] sm:$0xff]   ;;  %v506_v19 = vld [vmem:[#allocation7 + $0x10] sm:$0xff]  }
  0x2b   :  { %439 = vmatmul.mubr.msk.bf16.vlgmr.msra.gmra.mxu0 %vm99_vm1, %v77_v5  ;;  %444 = vmatprep.subr.bf16.mxu1 %v600_v0  ;;  %v505_v18 = vld [vmem:[#allocation7 + $0x18] sm:$0xff]   ;;  %v507_v32 = vld [vmem:[#allocation7 + $0x8] sm:$0xff]   ;;  %v508_v33 = vld [vmem:[#allocation7] sm:$0xff]  }
  0x2c   :  { %478 = vmatprep.mubr.msk.bf16.mxu0 %vm601_vm0, %v600_v0  ;;  %463 = vmatpush3.bf16.msra.mxu0 %v501_v14  ;;  %v394_v20 = vld [vmem:[%s710_s3] ss:$0 sm:$0xff] }
  0x2d   :  { %464 = vmatprep.subr.bf16.mxu0 %v600_v0  ;;  %v397_v24 = vld [vmem:[%s711_s4] ss:$0 sm:$0xff] }
  0x2e   :  { %445 = vmatpush3.bf16.msra.mxu1 %v494_v7  ;;  %v398_v34 = vld [vmem:[%s713_s6] ss:$0 sm:$0xff]  ;;  %s569_s6 = scalar_lea.vmem %s385_s11, 128 }
  0x2f   :  { %446 = vmatprep.subr.bf16.mxu1 %v600_v0  ;;  %v407_v42 = vld [vmem:[%s715_s8] ss:$0 sm:$0xff]  ;;  %p570_p1 = scmp.ne.s32.totalorder %s385_s11, %s569_s6  ;;  %p575_p3 = scmp.lt.s32.totalorder %s569_s6, %s569_s6 }
  0x30   :  { %465 = vmatpush3.bf16.msra.mxu0 %v502_v15 }
  0x31   :  { %466 = vmatprep.subr.bf16.mxu0 %v600_v0  ;;  %p576_p4 = por %p575_p3, %p574_p2 }
  0x32   :  { %447 = vmatpush3.bf16.msra.mxu1 %v495_v8 }
  0x33   :  { %448 = vmatprep.subr.bf16.mxu1 %v600_v0  ;;  %p577_p5 = pnand %p576_p4, %p570_p1 }
  0x34   :  { %467 = vmatpush3.bf16.msra.mxu0 %v503_v16 }
  0x35   :  { %468 = vmatprep.subr.bf16.mxu0 %v600_v0 }
  0x36   :  { %449 = vmatpush3.bf16.msra.mxu1 %v496_v9 }
  0x37   :  { %450 = vmatprep.subr.bf16.mxu1 %v600_v0 }
  0x38   :  { %469 = vmatpush3.bf16.msra.mxu0 %v504_v17 }
  0x39   :  { %470 = vmatprep.subr.bf16.mxu0 %v600_v0 }
  0x3a   :  { %451 = vmatpush3.bf16.msra.mxu1 %v497_v10 }
  0x3b   :  { %452 = vmatprep.subr.bf16.mxu1 %v600_v0 }
  0x3c   :  { %471 = vmatpush3.bf16.msra.mxu0 %v505_v18 }
  0x3d   :  { %472 = vmatprep.subr.bf16.mxu0 %v600_v0 }
  0x3e   :  { %453 = vmatpush3.bf16.msra.mxu1 %v498_v11 }
  0x3f   :  { %454 = vmatprep.subr.bf16.mxu1 %v600_v0 }
  0x40   :  { %473 = vmatpush3.bf16.msra.mxu0 %v506_v19 }
  0x41   :  { %474 = vmatprep.subr.bf16.mxu0 %v600_v0 }
  0x42   :  { %455 = vmatpush3.bf16.msra.mxu1 %v499_v12 }
  0x43   :  { %456 = vmatprep.subr.bf16.mxu1 %v600_v0 }
  0x44   :  { %475 = vmatpush3.bf16.msra.mxu0 %v507_v32 }
  0x45   :  { %476 = vmatprep.subr.bf16.mxu0 %v600_v0 }
  0x46   :  { %457 = vmatpush3.bf16.msra.mxu1 %v500_v13 }
  0x48   :  { %477 = vmatpush3.bf16.msra.mxu0 %v508_v33 }
  0xa4   :  { %v84_v21 = vpop.permute.xlu0 %83 }
  0xa5   :  { %v92_v22 = vmul.f32 %v394_v20, %v84_v21 }
  0xeb   :  { %v137_v23 = vpop.f32.mrf.mxu0 }
  0xec   :  { %v138_v25 = vadd.f32 %v137_v23, %v92_v22 }
  0xed   :  { %v440_v26 = vpop.f32.mrf.mxu0 }
  0xee   :  { %v150_v27 = vadd.f32 %v397_v24, %v138_v25 }
  0xef   :  { %v140_v28 = vpop.f32.mrf.mxu0 }
  0xf0   :  { %v151_v29 = vmax.f32 %v150_v27, 0.0 }
  0xf1   :  { %v441_v30 = vpop.f32.mrf.mxu0 }
  0xf2   :  { %v152_v31 = vpack.c.bf16 %v151_v29, %v151_v29 }
  0xf4   :  { %459 = vmatmul.mubr.bf16.vlgmr.msra.gmra.mxu1 %v152_v31 }
 0x1b4   :  { %v258_v35 = vpop.f32.mrf.mxu1 }
 0x1b5   :  { %v259_v36 = vadd.f32 %v398_v34, %v258_v35 }
 0x1b6   :  { %v460_v37 = vpop.f32.mrf.mxu1 }
 0x1b7   :  { %v264_v38 = vmax.f32 %v259_v36, 0.0 }
 0x1b8   :  { %v261_v39 = vpop.f32.mrf.mxu1 }
 0x1b9   :  { %v265_v40 = vpack.c.bf16 %v264_v38, %v264_v38 }
 0x1ba   :  { %v461_v41 = vpop.f32.mrf.mxu1 }
 0x1bb   :  { %479 = vmatmul.mubr.bf16.vlgmr.msra.gmra.mxu0 %v265_v40 }
 0x27b   :  { %v371_v43 = vpop.f32.mrf.mxu0 }
 0x27c   :  { %v372_v44 = vadd.f32 %v407_v42, %v371_v43 }
 0x27d   :  { %v480_v45 = vpop.f32.mrf.mxu0 }
 0x27e   :  { %377 = vst [vmem:[#allocation8] sm:$0xff] %v372_v44 }
 0x27f   :  { %v374_v46 = vpop.f32.mrf.mxu0 }
 0x280   :  { %580 = shalt.err (!%p577_p5)
}
 0x281   :  { %387 = dma.vmem_to_hbm [thread:$0]  %s385_s11, 128, %s716_s9, [#allocation4]   ;;  %v481_v47 = vpop.f32.mrf.mxu0 }
 0x282   :  { %593 = dma.done.wait [#allocation4], 128  }
 0x283   :  { %594 = vsyncadd [#allocation4], 4294967168 }
 0x284   :  { %391 = vsyncpa [#allocation3], 1 }
 0x285   :  { %392 = vsyncpa [#allocation6], 1 }
 0x286   :  { %393 = vsyncpa [#allocation4], 1 }

</bundles_post_ra>
